<compile_context>
chip_gen: v7x
topology: tpu7x:2x2x1
jax: 0.10.0
libtpu: 0.0.40
codegen_flags: <defaults>
</compile_context>

<pallas_src>
import functools
import math

import jax
import jax.numpy as jnp
from jax.experimental import pallas as pl
from jax.experimental.pallas import tpu as pltpu

_LANES = 512                   # lane-dense last dim (multiple of 128 -> unmasked vst)
_TARGET_BLOCK_BYTES = 4 << 20  # ~4 MiB of input per grid step (roofline knee)
_MIN_GRID_STEPS = 8            # aim for >=8 steps so v7x can shard across 2 TCs


def _cdiv(a: int, b: int) -> int:
    return (a + b - 1) // b


def _so_mask_kernel(lbl_ref, out_ref, *, bitmask_i32, extra_cls):
    x = lbl_ref[...].astype(jnp.int32)            # no-op for int32 labels
    if bitmask_i32 != 0:
        # LUT path: bit c of bitmask_i32 is set iff class c (0<=c<32) is "small".
        in_range = jnp.logical_and(x >= 0, x < 32)
        bit = jnp.bitwise_and(
            jnp.right_shift(jnp.int32(bitmask_i32), jnp.bitwise_and(x, 31)),
            jnp.int32(1))
        hit = jnp.logical_and(in_range, bit > 0)
    else:
        hit = jnp.zeros(x.shape, dtype=jnp.bool_)
    for c in extra_cls:                           # classes outside [0, 32): static unroll
        hit = jnp.logical_or(hit, x == c)
    out_ref[...] = hit.astype(out_ref.dtype)      # bool -> 0/1, no extra vselect


def small_object_mask(lbl: jax.Array, small_obj_cls_list, out_dtype=jnp.int8) -> jax.Array:
    """1 where lbl is in small_obj_cls_list, else 0. Same shape as lbl, dtype out_dtype."""
    cls_values = tuple(int(c) for c in small_obj_cls_list)
    bm = 0
    extra = []
    for c in cls_values:
        if 0 <= c < 32:
            bm |= 1 << c
        else:
            extra.append(c)
    if bm >= (1 << 31):
        bm -= 1 << 32                             # reinterpret as signed int32
    extra = tuple(sorted(set(extra)))

    shape = lbl.shape
    total = math.prod(shape)
    in_itemsize = jnp.dtype(lbl.dtype).itemsize
    out_itemsize = jnp.dtype(out_dtype).itemsize

    n_rows = _cdiv(total, _LANES)

    if n_rows <= 32:
        # Tiny tensor: a single block whose row extent equals the full array dim.
        tr = n_rows
    else:
        # ~4 MiB of input per step, row count a multiple of 32 (valid tiling for
        # int8 output and any integer input dtype).
        tr = max(32, (_TARGET_BLOCK_BYTES // (_LANES * in_itemsize)) // 32 * 32)
        # Keep >= _MIN_GRID_STEPS grid steps when the tensor permits (v7x 2 TCs).
        tr = min(tr, max(32, (_cdiv(n_rows, _MIN_GRID_STEPS) // 32) * 32))

    # Only pad the flat array to a multiple of _LANES (<=511 elements); the
    # partial last ROW block is handled by Pallas masking, not by padding.
    padded_total = n_rows * _LANES
    flat = lbl.reshape(-1)
    if padded_total != total:
        flat = jnp.pad(flat, (0, padded_total - total))
    x2d = flat.reshape(n_rows, _LANES)

    grid = (_cdiv(n_rows, tr),)

    in_block_bytes = tr * _LANES * in_itemsize
    out_block_bytes = tr * _LANES * out_itemsize
    # Double-buffered in+out blocks with headroom; 48 MiB cap is safe on v7x (64 MiB VMEM).
    vmem_limit = int(min(48 << 20, max(16 << 20, 4 * (in_block_bytes + out_block_bytes))))

    out2d = pl.pallas_call(
        functools.partial(_so_mask_kernel, bitmask_i32=bm, extra_cls=extra),
        out_shape=jax.ShapeDtypeStruct((n_rows, _LANES), out_dtype),
        grid_spec=pltpu.PrefetchScalarGridSpec(
            num_scalar_prefetch=0,
            grid=grid,
            in_specs=[pl.BlockSpec((tr, _LANES), lambda i: (i, 0))],
            out_specs=pl.BlockSpec((tr, _LANES), lambda i: (i, 0)),
        ),
        compiler_params=pltpu.CompilerParams(
            dimension_semantics=("parallel",),
            vmem_limit_bytes=vmem_limit,
        ),
        cost_estimate=pl.CostEstimate(
            flops=padded_total * 8,
            transcendentals=0,
            bytes_accessed=padded_total * (in_itemsize + out_itemsize),
        ),
    )(x2d)

    out = out2d.reshape(-1)
    if padded_total != total:
        # Paired with the <=511-element pad above; removes any tail hits
        # produced by padded zeros when class 0 is in the list.
        out = out[:total]
    return out.reshape(shape)


def _reference(lbl: jax.Array, small_obj_cls_list) -> jax.Array:
    """Plain-JAX reference matching the torch forward (values as int32)."""
    m = jnp.zeros(lbl.shape, dtype=jnp.int32)
    ones = jnp.ones_like(m)
    for c in small_obj_cls_list:
        m = jnp.where(lbl == c, ones, m)
    return m


def _run_case(key, shape, lo, hi, sol):
    lbl = jax.random.randint(key, shape, lo, hi, dtype=jnp.int32)
    fn = jax.jit(functools.partial(small_object_mask, small_obj_cls_list=tuple(sol)))
    out = jax.block_until_ready(fn(lbl))
    ref = _reference(lbl, sol)
    assert out.shape == lbl.shape
    assert bool(jnp.all(out.astype(jnp.int32) == ref)), f"mismatch for shape={shape} sol={sol}"


if __name__ == "__main__":
    key = jax.random.PRNGKey(0)
    k1, k2, k3 = jax.random.split(key, 3)

    # Primary case: label-like (N, C, H, W) tensor, Cityscapes-style class ids.
    _run_case(k1, (2, 4, 16, 16), 0, 19, [5, 6, 7, 11, 12, 17, 18])

    # Ragged size (not a multiple of 512), ignore-style labels (255, negative),
    # class list with members outside [0, 32) and class 0 (exercises pad+slice path).
    _run_case(k2, (3, 17, 17), -2, 300, [0, 7, 33, 255])

    # Partial last row-block (50 rows, 32-row blocks -> grid of 2 with masked tail).
    _run_case(k3, (2, 5, 2560), 0, 19, [5, 6, 7, 11, 12, 17, 18])

    print("KERNEL_OK")
</pallas_src>

<mosaic_0001>
module attributes {stable_mosaic.version = 11 : i64} {
  func.func @_so_mask_kernel(%arg0: i32, %arg1: memref<4x512xi32, #tpu.memory_space<vmem>>, %arg2: memref<4x512xi8, #tpu.memory_space<vmem>>) attributes {dimension_semantics = [#tpu.dimension_semantics<parallel>], iteration_bounds = array<i64: 1>, scalar_prefetch = 0 : i64, scratch_operands = 0 : i64, tpu.core_type = #tpu.core_type<tc>, window_params = [{transform_indices = @transform_0, window_bounds = array<i64: 4, 512>}, {transform_indices = @transform_1, window_bounds = array<i64: 4, 512>}]} {
    %c0 = arith.constant 0 : index
    %c0_0 = arith.constant 0 : index
    %0 = vector.load %arg1[%c0, %c0_0] : memref<4x512xi32, #tpu.memory_space<vmem>>, vector<4x512xi32>
    %c0_i32 = arith.constant 0 : i32
    %1 = vector.broadcast %c0_i32 : i32 to vector<4x512xi32>
    %2 = arith.cmpi sge, %0, %1 : vector<4x512xi32>
    %c32_i32 = arith.constant 32 : i32
    %3 = vector.broadcast %c32_i32 : i32 to vector<4x512xi32>
    %4 = arith.cmpi slt, %0, %3 : vector<4x512xi32>
    %5 = arith.andi %2, %4 : vector<4x512xi1>
    %c31_i32 = arith.constant 31 : i32
    %6 = vector.broadcast %c31_i32 : i32 to vector<4x512xi32>
    %7 = arith.andi %0, %6 : vector<4x512xi32>
    %c399584_i32 = arith.constant 399584 : i32
    %8 = vector.broadcast %c399584_i32 : i32 to vector<4x512xi32>
    %9 = arith.shrsi %8, %7 : vector<4x512xi32>
    %c1_i32 = arith.constant 1 : i32
    %10 = vector.broadcast %c1_i32 : i32 to vector<4x512xi32>
    %11 = arith.andi %9, %10 : vector<4x512xi32>
    %c0_i32_1 = arith.constant 0 : i32
    %12 = vector.broadcast %c0_i32_1 : i32 to vector<4x512xi32>
    %13 = arith.cmpi sgt, %11, %12 : vector<4x512xi32>
    %14 = arith.andi %5, %13 : vector<4x512xi1>
    %15 = arith.extui %14 : vector<4x512xi1> to vector<4x512xi8>
    %c0_2 = arith.constant 0 : index
    %c0_3 = arith.constant 0 : index
    %16 = vector.load %arg2[%c0_2, %c0_3] : memref<4x512xi8, #tpu.memory_space<vmem>>, vector<4x512xi8>
    tpu.vector_store %arg2[%c0_2, %c0_3], %15 {strides = array<i32>} : memref<4x512xi8, #tpu.memory_space<vmem>>, vector<4x512xi8>,
    return
  }
  func.func @transform_0(%arg0: i32) -> (i32, i32) {
    %c0_i32 = arith.constant 0 : i32
    %c0_i32_0 = arith.constant 0 : i32
    return %arg0, %c0_i32 : i32, i32
  }
  func.func @transform_1(%arg0: i32) -> (i32, i32) {
    %c0_i32 = arith.constant 0 : i32
    %c0_i32_0 = arith.constant 0 : i32
    return %arg0, %c0_i32 : i32, i32
  }
}

</mosaic_0001>

<bundles_post_ra>
// kernel: small_object_mask.1
= control target key start
LH: loop header
LB: loop body
LE: loop exit
PB: predicated region body
PF: predicated region fallthrough
CT: control target
= control target key end

     0   :  { %v99_v4 = vmov 399584   ;;  %v100_v9 = vmov 1966171168   ;;  %v37_v11 = vlaneseq  ;;  %v101_v12 = vmov 0   ;;  %s121_s0 = inlined_call_operand.vmem [shape: s32[4,512], index: 0, kind: input, shape index: {}]   ;;  %s122_s1 = inlined_call_operand.vmem [shape: s8[4,512], index: 1, kind: output, shape index: {}]  }
   0x1   :  { %v10_v0 = vld [vmem:[%s121_s0] sm:$0xff]  ;;  %v11_v1 = vld [vmem:[%s121_s0 + $0x8] sm:$0xff]  ;;  %v35_v10 = vunpack.c.l.s4 %v100_v9 }
   0x2   :  { %v18_v2 = vand.u32 31, %v10_v0  ;;  %v19_v3 = vand.u32 31, %v11_v1  ;;  %vm12_vm0 = vcmp.ge.s32.totalorder %v10_v0, 0  ;;  %vm14_vm1 = vcmp.lt.s32.totalorder %v10_v0, 32 }
   0x3   :  { %vm13_vm2 = vcmp.ge.s32.totalorder %v11_v1, 0  ;;  %vm15_vm3 = vcmp.lt.s32.totalorder %v11_v1, 32  ;;  %vm16_vm4 = vmand %vm12_vm0, %vm14_vm1  ;;  %v36_v14 = vunpack.c.0.s8 %v35_v10  ;;  %v38_v15 = vshrl.u32 %v37_v11, 7 }
   0x4   :  { %v20_v5 = vshra.s32 %v99_v4, %v18_v2  ;;  %v21_v6 = vshra.s32 %v99_v4, %v19_v3  ;;  %vm17_vm5 = vmand %vm13_vm2, %vm15_vm3 }
   0x5   :  { %v39_v19 = vsub.s32 %v36_v14, %v38_v15 }
   0x6   :  { %v22_v7 = vand.u32 1, %v20_v5  ;;  %v23_v8 = vand.u32 1, %v21_v6 }
   0x8   :  { %vm24_vm6 = vcmp.gt.s32.totalorder %v22_v7, 0  ;;  %vm25_vm7 = vcmp.gt.s32.totalorder %v23_v8, 0 }
   0x9   :  { %vm26_vm8 = vmand %vm16_vm4, %vm24_vm6 }
   0xa   :  { %vm27_vm9 = vmand %vm17_vm5, %vm25_vm7  ;;  %v28_v13 = vsel %vm26_vm8, 1, %v101_v12 }
   0xb   :  { %v29_v16 = vsel %vm27_vm9, 1, %v101_v12 }
   0xc   :  { %v30_v17 = vpack.c.b16 %v29_v16, %v28_v13 }
   0xe   :  { %v31_v18 = vpack.c.b8 %v30_v17, %v30_v17 }
  0x10   :  { %vm32_vm10 = vnez %v31_v18 }
  0x11   :  { %v33_v20 = vsel %vm32_vm10, 16843009, %v101_v12 }
  0x12   :  { %v40_v21 = vrot.slane %v33_v20, %v39_v19 }
  0x14   :  { %v41_v22 = vcombine.high %v40_v21, %v40_v21  ;;  %v48_v23 = vrot.slane %v40_v21, %v39_v19 }
  0x16   :  { %v55_v24 = vrot.slane %v41_v22, %v39_v19  ;;  %v56_v25 = vcombine.high %v48_v23, %v48_v23  ;;  %vm58_vm11 = vnez %v48_v23 }
  0x17   :  { %v62_v26 = vsel %vm58_vm11, 16843009, %v101_v12 }
  0x18   :  { %v57_v27 = vcombine.high %v55_v24, %v55_v24  ;;  %vm59_vm12 = vnez %v55_v24  ;;  %vm60_vm13 = vnez %v56_v25 }
  0x19   :  { %v63_v28 = vsel %vm59_vm12, 16843009, %v101_v12  ;;  %v64_v29 = vsel %vm60_vm13, 16843009, %v101_v12 }
  0x1a   :  { %vm61_vm14 = vnez %v57_v27  ;;  %v66_v30 = vcombine.low %v62_v26, %v63_v28 }
  0x1b   :  { %v65_v31 = vsel %vm61_vm14, 16843009, %v101_v12 }
  0x1c   :  { %v67_v32 = vcombine.low %v64_v29, %v65_v31  ;;  %v74_v33 = vrot.slane %v66_v30, %v39_v19 }
  0x1e   :  { %v81_v34 = vrot.slane %v67_v32, %v39_v19 }
  0x20   :  { %v82_v35 = vcombine.low %v74_v33, %v81_v34 }
  0x22   :  { %95 = vst.sshfl [vmem:[%s122_s1] sm:$0x55 pattern:$0x73625140] %v82_v35 }

</bundles_post_ra>
